<compile_context>
chip_gen: v7x
topology: tpu7x:2x2x1
jax: 0.10.0
libtpu: 0.0.40
codegen_flags: <defaults>
</compile_context>

<pallas_src>
import jax
import jax.numpy as jnp
from jax.experimental import pallas as pl
from jax.experimental.pallas import tpu as pltpu

LEAKY_SLOPE = 0.01   # torch.nn.LeakyReLU default negative_slope
H1 = 128             # hidden sizes from the PyTorch module
H2 = 32
LANE = 128
SUB = 8              # f32 sublane tile
SUB_BF16 = 16        # bf16 sublane packing


def _round_up(n, m):
    return ((n + m - 1) // m) * m


def _leaky_relu(x):
    # identical to where(x>0, x, a*x) for slope in (0,1); cheaper on the VPU
    return jnp.maximum(x, LEAKY_SLOPE * x)


def pack_params(params, len_states):
    """Pack weights into one bf16 slab and biases into one f32 (8,128) slab.

    Weight slab sublane layout (lane dim = 128 everywhere, bf16):
      [0, K1)            w1  (len_states rows, zero-padded to K1 = round16)
      [K1, K1+128)       w2  (128 x 32  -> zero-padded to 128 x 128)
      [K1+128, K1+256)   w3  (32 x num_actions -> zero-padded to 128 x 128)
    All piece offsets are multiples of 16 (bf16 sublane pack).  Zero padding
    keeps the math exact: padded hidden columns are LeakyReLU(0)=0 and padded
    w3 rows/cols are 0, so the extra output lanes are exactly 0.

    Bias slab (f32, (8,128)): row0 = b1, row1 = b2 (padded), row2 = b3 (padded).
    """
    w1, w2, w3 = params["w1"], params["w2"], params["w3"]
    b1, b2, b3 = params["b1"], params["b2"], params["b3"]
    num_actions = w3.shape[1]
    K1 = _round_up(max(len_states, SUB_BF16), SUB_BF16)

    def pad2(a, rows, cols):
        return jnp.pad(a, ((0, rows - a.shape[0]), (0, cols - a.shape[1])))

    w_packed = jnp.concatenate(
        [pad2(w1, K1, LANE), pad2(w2, H1, LANE), pad2(w3, LANE, LANE)],
        axis=0).astype(jnp.bfloat16)

    b_packed = jnp.zeros((SUB, LANE), jnp.float32)
    b_packed = b_packed.at[0, :H1].set(b1.astype(jnp.float32))
    b_packed = b_packed.at[1, :H2].set(b2.astype(jnp.float32))
    b_packed = b_packed.at[2, :num_actions].set(b3.astype(jnp.float32))

    off = {
        "K1": K1,
        "w_rows": int(w_packed.shape[0]),
        "len_states": len_states,
        "num_actions": num_actions,
    }
    return w_packed, b_packed, off


def _make_kernel(off):
    ls = off["len_states"]
    K1 = off["K1"]

    def kernel(x_ref, w_ref, b_ref, o_ref):
        # x tile: [tb, ls] f32 ; w_ref: [w_rows,128] bf16 ; b_ref: [8,128] f32
        x = x_ref[...].astype(jnp.bfloat16)

        w1 = w_ref[0:ls, :]                               # [ls, 128] bf16
        h1 = jnp.dot(x, w1, preferred_element_type=jnp.float32) + b_ref[0:1, :]
        h1 = _leaky_relu(h1)                              # f32 [tb, 128]

        w2 = w_ref[K1:K1 + H1, :]                         # [128, 128] bf16
        h2 = jnp.dot(h1.astype(jnp.bfloat16), w2,
                     preferred_element_type=jnp.float32) + b_ref[1:2, :]
        h2 = _leaky_relu(h2)                              # f32, cols>=32 are 0

        w3 = w_ref[K1 + H1:K1 + H1 + LANE, :]             # [128, 128] bf16
        out = jnp.dot(h2.astype(jnp.bfloat16), w3,
                      preferred_element_type=jnp.float32) + b_ref[2:3, :]

        o_ref[...] = out                                  # lane-dense 128-wide f32 store

    return kernel


def make_dqn_forward(off, *, tile_b=2048):
    """Returns a jitted fn (x, w_packed, b_packed) -> [B, num_actions] f32."""
    kernel = _make_kernel(off)
    w_rows = off["w_rows"]
    ls = off["len_states"]
    num_actions = off["num_actions"]

    @jax.jit
    def fwd(x, w_packed, b_packed):
        B = x.shape[0]
        Bp0 = _round_up(max(B, SUB), SUB)

        tb = min(tile_b, Bp0)
        # Ensure >=2 batch tiles when the batch allows it, so the "parallel"
        # axis actually shards across both TensorCores on v7x.
        if Bp0 >= 2 * SUB:
            tb = min(tb, _round_up(-(-Bp0 // 2), SUB))
        # v6e/v7x MXU is 256-wide: keep large tiles 256-row aligned.
        if tb >= 256:
            tb = (tb // 256) * 256
        tb = _round_up(tb, SUB)
        Bp = _round_up(Bp0, tb)
        grid_b = Bp // tb

        # Only the batch dim is padded (zeros); padded rows are discarded below.
        xp = jnp.pad(x.astype(jnp.float32), ((0, Bp - B), (0, 0)))

        out = pl.pallas_call(
            kernel,
            out_shape=jax.ShapeDtypeStruct((Bp, LANE), jnp.float32),
            grid=(grid_b,),
            in_specs=[
                # batch-tiled x at native len_states lane width
                pl.BlockSpec((tb, ls), lambda i: (i, 0)),
                # grid-invariant parameter slabs: single-buffered, VMEM-resident
                pl.BlockSpec((w_rows, LANE), lambda i: (0, 0),
                             pipeline_mode=pl.Buffered(1)),
                pl.BlockSpec((SUB, LANE), lambda i: (0, 0),
                             pipeline_mode=pl.Buffered(1)),
            ],
            out_specs=pl.BlockSpec((tb, LANE), lambda i: (i, 0)),
            compiler_params=pltpu.CompilerParams(
                dimension_semantics=("parallel",),  # shard batch tiles across TCs
            ),
        )(xp, w_packed, b_packed)

        # Padded batch rows and zero-padded Q-value lanes are removed here,
        # inside jit, BEFORE any downstream argmax over actions.
        return out[:B, :num_actions]

    return fwd


def init_params(key, len_states, num_actions):
    """Synthetic init matching nn.Linear shapes.
    torch Linear weight is (out,in); we store the transpose (in,out)."""
    ks = jax.random.split(key, 6)

    def lin(kw, kb, fan_in, fan_out):
        bound = 1.0 / jnp.sqrt(fan_in)
        w = jax.random.uniform(kw, (fan_in, fan_out), jnp.float32, -bound, bound)
        b = jax.random.uniform(kb, (fan_out,), jnp.float32, -bound, bound)
        return w, b

    w1, b1 = lin(ks[0], ks[1], len_states, H1)
    w2, b2 = lin(ks[2], ks[3], H1, H2)
    w3, b3 = lin(ks[4], ks[5], H2, num_actions)
    return {"w1": w1, "b1": b1, "w2": w2, "b2": b2, "w3": w3, "b3": b3}


def dqn_forward_ref(x, p):
    """Reference with the same bf16 operand rounding the kernel uses."""
    def bf(a):
        return a.astype(jnp.bfloat16).astype(jnp.float32)
    h1 = _leaky_relu(bf(x) @ bf(p["w1"]) + p["b1"])
    h2 = _leaky_relu(bf(h1) @ bf(p["w2"]) + p["b2"])
    return bf(h2) @ bf(p["w3"]) + p["b3"]


if __name__ == "__main__":
    key = jax.random.PRNGKey(0)
    k_params, k_x = jax.random.split(key)

    len_states = 16
    num_actions = 6
    batch = 8

    params = init_params(k_params, len_states, num_actions)
    w_packed, b_packed, off = pack_params(params, len_states)
    x = jax.random.normal(k_x, (batch, len_states), jnp.float32)

    fwd = make_dqn_forward(off)
    out = jax.block_until_ready(fwd(x, w_packed, b_packed))

    ref = dqn_forward_ref(x, params)
    assert out.shape == (batch, num_actions)
    assert jnp.allclose(out, ref, atol=1e-3, rtol=1e-3), "mismatch vs reference"

    print("KERNEL_OK")
</pallas_src>

<mosaic_0001>
module attributes {stable_mosaic.version = 11 : i64} {
  func.func @kernel(%arg0: i32, %arg1: memref<8x16xf32, #tpu.memory_space<vmem>>, %arg2: memref<272x128xbf16, #tpu.memory_space<vmem>>, %arg3: memref<8x128xf32, #tpu.memory_space<vmem>>, %arg4: memref<8x128xf32, #tpu.memory_space<vmem>>) attributes {dimension_semantics = [#tpu.dimension_semantics<parallel>], iteration_bounds = array<i64: 1>, scalar_prefetch = 0 : i64, scratch_operands = 0 : i64, tpu.core_type = #tpu.core_type<tc>, window_params = [{transform_indices = @transform_0, window_bounds = array<i64: 8, 16>}, {pipeline_mode = #tpu.pipeline_mode<synchronous>, transform_indices = @transform_1, window_bounds = array<i64: 272, 128>}, {pipeline_mode = #tpu.pipeline_mode<synchronous>, transform_indices = @transform_2, window_bounds = array<i64: 8, 128>}, {transform_indices = @transform_3, window_bounds = array<i64: 8, 128>}]} {
    %c0 = arith.constant 0 : index
    %c0_0 = arith.constant 0 : index
    %0 = vector.load %arg1[%c0, %c0_0] : memref<8x16xf32, #tpu.memory_space<vmem>>, vector<8x16xf32>
    %1 = arith.truncf %0 : vector<8x16xf32> to vector<8x16xbf16>
    %c0_1 = arith.constant 0 : index
    %c0_2 = arith.constant 0 : index
    %2 = vector.load %arg2[%c0_1, %c0_2] : memref<272x128xbf16, #tpu.memory_space<vmem>>, vector<16x128xbf16>
    %cst = arith.constant dense<0.000000e+00> : vector<8x128xf32>
    %3 = tpu.matmul %1, %2, %cst {dimension_numbers = #tpu.dot_dimension_numbers<[1], [0], [0], [1], [0, 0, 1, 1], [], []>} : vector<8x16xbf16>, vector<16x128xbf16>, vector<8x128xf32> -> vector<8x128xf32>
    %c0_3 = arith.constant 0 : index
    %c0_4 = arith.constant 0 : index
    %4 = vector.load %arg3[%c0_3, %c0_4] : memref<8x128xf32, #tpu.memory_space<vmem>>, vector<1x128xf32>
    %5 = vector.broadcast %4 : vector<1x128xf32> to vector<8x128xf32>
    %6 = arith.addf %3, %5 : vector<8x128xf32>
    %cst_5 = arith.constant 0.00999999977 : f32
    %7 = vector.broadcast %cst_5 : f32 to vector<8x128xf32>
    %8 = arith.mulf %7, %6 : vector<8x128xf32>
    %9 = arith.maximumf %6, %8 : vector<8x128xf32>
    %c16 = arith.constant 16 : index
    %c0_6 = arith.constant 0 : index
    %10 = vector.load %arg2[%c16, %c0_6] : memref<272x128xbf16, #tpu.memory_space<vmem>>, vector<128x128xbf16>
    %11 = arith.truncf %9 : vector<8x128xf32> to vector<8x128xbf16>
    %cst_7 = arith.constant dense<0.000000e+00> : vector<8x128xf32>
    %12 = tpu.matmul %11, %10, %cst_7 {dimension_numbers = #tpu.dot_dimension_numbers<[1], [0], [0], [1], [0, 0, 1, 1], [], []>} : vector<8x128xbf16>, vector<128x128xbf16>, vector<8x128xf32> -> vector<8x128xf32>
    %c1 = arith.constant 1 : index
    %c0_8 = arith.constant 0 : index
    %13 = vector.load %arg3[%c1, %c0_8] : memref<8x128xf32, #tpu.memory_space<vmem>>, vector<1x128xf32>
    %14 = vector.broadcast %13 : vector<1x128xf32> to vector<8x128xf32>
    %15 = arith.addf %12, %14 : vector<8x128xf32>
    %cst_9 = arith.constant 0.00999999977 : f32
    %16 = vector.broadcast %cst_9 : f32 to vector<8x128xf32>
    %17 = arith.mulf %16, %15 : vector<8x128xf32>
    %18 = arith.maximumf %15, %17 : vector<8x128xf32>
    %c144 = arith.constant 144 : index
    %c0_10 = arith.constant 0 : index
    %19 = vector.load %arg2[%c144, %c0_10] : memref<272x128xbf16, #tpu.memory_space<vmem>>, vector<128x128xbf16>
    %20 = arith.truncf %18 : vector<8x128xf32> to vector<8x128xbf16>
    %cst_11 = arith.constant dense<0.000000e+00> : vector<8x128xf32>
    %21 = tpu.matmul %20, %19, %cst_11 {dimension_numbers = #tpu.dot_dimension_numbers<[1], [0], [0], [1], [0, 0, 1, 1], [], []>} : vector<8x128xbf16>, vector<128x128xbf16>, vector<8x128xf32> -> vector<8x128xf32>
    %c2 = arith.constant 2 : index
    %c0_12 = arith.constant 0 : index
    %22 = vector.load %arg3[%c2, %c0_12] : memref<8x128xf32, #tpu.memory_space<vmem>>, vector<1x128xf32>
    %23 = vector.broadcast %22 : vector<1x128xf32> to vector<8x128xf32>
    %24 = arith.addf %21, %23 : vector<8x128xf32>
    %c0_13 = arith.constant 0 : index
    %c0_14 = arith.constant 0 : index
    %25 = vector.load %arg4[%c0_13, %c0_14] : memref<8x128xf32, #tpu.memory_space<vmem>>, vector<8x128xf32>
    tpu.vector_store %arg4[%c0_13, %c0_14], %24 {strides = array<i32>} : memref<8x128xf32, #tpu.memory_space<vmem>>, vector<8x128xf32>,
    return
  }
  func.func @transform_0(%arg0: i32) -> (i32, i32) {
    %c0_i32 = arith.constant 0 : i32
    %c0_i32_0 = arith.constant 0 : i32
    return %arg0, %c0_i32 : i32, i32
  }
  func.func @transform_1(%arg0: i32) -> (i32, i32) {
    %c0_i32 = arith.constant 0 : i32
    %c0_i32_0 = arith.constant 0 : i32
    %c0_i32_1 = arith.constant 0 : i32
    return %c0_i32, %c0_i32_0 : i32, i32
  }
  func.func @transform_2(%arg0: i32) -> (i32, i32) {
    %c0_i32 = arith.constant 0 : i32
    %c0_i32_0 = arith.constant 0 : i32
    %c0_i32_1 = arith.constant 0 : i32
    return %c0_i32, %c0_i32_0 : i32, i32
  }
  func.func @transform_3(%arg0: i32) -> (i32, i32) {
    %c0_i32 = arith.constant 0 : i32
    %c0_i32_0 = arith.constant 0 : i32
    return %arg0, %c0_i32 : i32, i32
  }
}

</mosaic_0001>

<bundles_post_ra>
// kernel: fwd.1
= control target key start
LH: loop header
LB: loop body
LE: loop exit
PB: predicated region body
PF: predicated region fallthrough
CT: control target
= control target key end

     0   :  { %8 = vsyncpa [#allocation3], 0  ;;  %s655_s0 = inlined_call_operand.hbm [shape: f32[8,16], index: 0, kind: input, shape index: {}]   ;;  %s656_s1 = inlined_call_operand.hbm [shape: bf16[272,128], index: 1, kind: input, shape index: {}]   ;;  %s657_s2 = inlined_call_operand.hbm [shape: f32[8,128], index: 2, kind: input, shape index: {}]   ;;  %s658_s3 = inlined_call_operand.hbm [shape: f32[8,128], index: 3, kind: output, shape index: {}]  }
   0x1   :  { %9 = vsyncpa [#allocation6], 0 }
   0x2   :  { %10 = vsyncpa [#allocation4], 0  ;;  %s559_s12 = smov [#allocation5]   ;;  %s465_s16 = scalar_lea.hbm %s656_s1, 2176 }
   0x3   :  { %s26_s13 = sshll.u32 %s559_s12, 4  ;;  %p466_p0 = scmp.ne.s32.totalorder %s656_s1, %s465_s16  ;;  %s27_s13 = int_to_ptr.vmem [resolvable:$true] %s26_s13 }
   0x4   :  { %p469_p1 = scmp.lt.u32.totalorder %s465_s16, %s656_s1 }
   0x6   :  { %p471_p2 = pnand %p469_p1, %p466_p0 }
   0x8   :  { %474 = shalt.err (!%p471_p2)
}
   0x9   :  { %s475_s21 = scalar_lea.vmem %s27_s13, 2176  ;;  %p480_p4 = scmp.lt.s32.totalorder %s27_s13, %s27_s13 }
   0xa   :  { %p476_p3 = scmp.ne.s32.totalorder %s27_s13, %s475_s21  ;;  %p481_p5 = scmp.lt.s32.totalorder %s475_s21, %s475_s21 }
   0xc   :  { %p482_p6 = por %p481_p5, %p480_p4 }
   0xe   :  { %p483_p7 = pnand %p482_p6, %p476_p3 }
  0x10   :  { %486 = shalt.err (!%p483_p7)
}
  0x11   :  { %s560_s22 = smov 64   ;;  %s561_s23 = smov 4  }
  0x12   :  { %32 = dma.hbm_to_vmem [thread:$0]  %s656_s1, 2176, %s27_s13, [#allocation6], %s560_s22, %s560_s22, %s561_s23  }
  0x13   :  { %s562_s26 = smov [#allocation2]   ;;  %s563_s28 = smov [#allocation7]  }
  0x14   :  { %s17_s27 = sshll.u32 %s562_s26, 4  ;;  %s39_s29 = sshll.u32 %s563_s28, 4  ;;  %s18_s27 = int_to_ptr.vmem [resolvable:$true] %s17_s27  ;;  %s40_s29 = int_to_ptr.vmem [resolvable:$true] %s39_s29 }
  0x15   :  { %s487_s5 = scalar_lea.hbm %s655_s0, 128 }
  0x16   :  { %p488_p8 = scmp.ne.s32.totalorder %s655_s0, %s487_s5  ;;  %p491_p9 = scmp.lt.u32.totalorder %s487_s5, %s655_s0 }
  0x18   :  { %p493_p10 = pnand %p491_p9, %p488_p8 }
  0x1a   :  { %496 = shalt.err (!%p493_p10)
}
  0x1b   :  { %s497_s1 = scalar_lea.vmem %s18_s27, 128  ;;  %p502_p12 = scmp.lt.s32.totalorder %s18_s27, %s18_s27 }
  0x1c   :  { %p498_p11 = scmp.ne.s32.totalorder %s18_s27, %s497_s1  ;;  %p503_p13 = scmp.lt.s32.totalorder %s497_s1, %s497_s1 }
  0x1e   :  { %p504_p0 = por %p503_p13, %p502_p12 }
  0x20   :  { %p505_p1 = pnand %p504_p0, %p498_p11 }
  0x22   :  { %508 = shalt.err (!%p505_p1)
}
  0x23   :  { %20 = dma.hbm_to_vmem [thread:$0]  %s655_s0, 128, %s18_s27, [#allocation3]  }
  0x24   :  { %s509_s14 = scalar_lea.hbm %s657_s2, 128 }
  0x25   :  { %p510_p2 = scmp.ne.s32.totalorder %s657_s2, %s509_s14  ;;  %p513_p3 = scmp.lt.u32.totalorder %s509_s14, %s657_s2 }
  0x27   :  { %p515_p4 = pnand %p513_p3, %p510_p2 }
  0x29   :  { %518 = shalt.err (!%p515_p4)
}
  0x2a   :  { %s519_s19 = scalar_lea.vmem %s40_s29, 128  ;;  %p524_p6 = scmp.lt.s32.totalorder %s40_s29, %s40_s29 }
  0x2b   :  { %p520_p5 = scmp.ne.s32.totalorder %s40_s29, %s519_s19  ;;  %p525_p7 = scmp.lt.s32.totalorder %s519_s19, %s519_s19 }
  0x2d   :  { %p526_p8 = por %p525_p7, %p524_p6 }
  0x2f   :  { %p527_p9 = pnand %p526_p8, %p520_p5 }
  0x31   :  { %530 = shalt.err (!%p527_p9)
}
  0x32   :  { %42 = dma.hbm_to_vmem [thread:$0]  %s657_s2, 128, %s40_s29, [#allocation6]  }
  0x33   :  { %553 = dma.done.wait [#allocation3], 128  }
  0x34   :  { %554 = vsyncadd [#allocation3], 4294967168 }
  0x35   :  { %555 = dma.done.wait [#allocation6], 2304  }
  0x36   :  { %556 = vsyncadd [#allocation6], 4294964992  ;;  %v564_v0 = vmov 0.0   ;;  %vm565_vm0 = vmmov 0   ;;  %v448_v1 = vld [vmem:[#allocation5] sm:$0xff]   ;;  %v53_v2 = vld [vmem:[#allocation2] sm:$0xff] }
  0x37   :  { %394 = vmatprep.subr.bf16.mxu0 %v564_v0  ;;  %396 = vmatprep.mubr.msk.bf16.mxu0 %vm565_vm0, %v564_v0  ;;  %v54_v3 = vpack.c.bf16 %v53_v2, %v53_v2  ;;  %vm68_vm1 = vcmask 130048   ;;  %v449_v4 = vld [vmem:[#allocation5 + $0x8] sm:$0xff]   ;;  %v450_v5 = vld [vmem:[#allocation5 + $0x10] sm:$0xff]   ;;  %v451_v6 = vld [vmem:[#allocation5 + $0x18] sm:$0xff]   ;;  %s566_s2 = smov [#allocation8]  }
  0x38   :  { %400 = vmatprep.subr.bf16.mxu1 %v564_v0  ;;  %416 = vmatprep.mubr.msk.bf16.mxu1 %vm565_vm0, %v564_v0  ;;  %v452_v7 = vld [vmem:[#allocation5 + $0x20] sm:$0xff]   ;;  %v453_v8 = vld [vmem:[#allocation5 + $0x28] sm:$0xff]   ;;  %v454_v9 = vld [vmem:[#allocation5 + $0x30] sm:$0xff]   ;;  %s343_s21 = sshll.u32 %s566_s2, 4  ;;  %s344_s21 = int_to_ptr.vmem [resolvable:$true] %s343_s21 }
  0x39   :  { %395 = vmatpush3.bf16.msra.mxu0 %v448_v1  ;;  %401 = vmatpush3.bf16.msra.mxu1 %v449_v4  ;;  %v455_v10 = vld [vmem:[#allocation5 + $0x38] sm:$0xff]   ;;  %v456_v11 = vld [vmem:[#allocation5 + $0x40] sm:$0xff]   ;;  %v457_v12 = vld [vmem:[#allocation5 + $0x48] sm:$0xff]   ;;  %s531_s22 = scalar_lea.vmem %s344_s21, 128  ;;  %p536_p11 = scmp.lt.s32.totalorder %s344_s21, %s344_s21 }
  0x3a   :  { %420 = vmatprep.subr.bf16.mxu0 %v564_v0  ;;  %402 = vmatprep.subr.bf16.mxu1 %v564_v0  ;;  %v458_v13 = vld [vmem:[#allocation5 + $0x50] sm:$0xff]   ;;  %v459_v14 = vld [vmem:[#allocation5 + $0x58] sm:$0xff]   ;;  %v460_v15 = vld [vmem:[#allocation5 + $0x60] sm:$0xff]   ;;  %p532_p10 = scmp.ne.s32.totalorder %s344_s21, %s531_s22  ;;  %p537_p12 = scmp.lt.s32.totalorder %s531_s22, %s531_s22 }
  0x3b   :  { %v461_v16 = vld [vmem:[#allocation5 + $0x68] sm:$0xff]   ;;  %v462_v17 = vld [vmem:[#allocation5 + $0x70] sm:$0xff]   ;;  %v463_v27 = vld [vmem:[#allocation5 + $0x78] sm:$0xff]  }
  0x3c   :  { %397 = vmatmul.mubr.msk.bf16.vlgmr.msra.gmra.mrb[0].mxu0 %vm68_vm1, %v54_v3  ;;  %v353_v18 = vld [vmem:[#allocation7] ss:$0 sm:$0xff]  ;;  %v464_v28 = vld [vmem:[#allocation5 + $0x80] sm:$0xff]   ;;  %v356_v29 = vld [vmem:[#allocation7 + $0x1] ss:$0 sm:$0xff]  ;;  %p538_p13 = por %p537_p12, %p536_p11 }
  0x3d   :  { %436 = vmatprep.mubr.msk.bf16.mxu0 %vm565_vm0, %v564_v0  ;;  %403 = vmatpush3.bf16.msra.mxu1 %v450_v5  ;;  %v365_v38 = vld [vmem:[#allocation7 + $0x2] ss:$0 sm:$0xff] }
  0x3e   :  { %404 = vmatprep.subr.bf16.mxu1 %v564_v0  ;;  %421 = vmatpush3.bf16.msra.mxu0 %v457_v12  ;;  %p539_p0 = pnand %p538_p13, %p532_p10 }
  0x3f   :  { %422 = vmatprep.subr.bf16.mxu0 %v564_v0 }
  0x41   :  { %405 = vmatpush3.bf16.msra.mxu1 %v451_v6 }
  0x42   :  { %406 = vmatprep.subr.bf16.mxu1 %v564_v0  ;;  %423 = vmatpush3.bf16.msra.mxu0 %v458_v13 }
  0x43   :  { %424 = vmatprep.subr.bf16.mxu0 %v564_v0 }
  0x45   :  { %407 = vmatpush3.bf16.msra.mxu1 %v452_v7 }
  0x46   :  { %408 = vmatprep.subr.bf16.mxu1 %v564_v0  ;;  %425 = vmatpush3.bf16.msra.mxu0 %v459_v14 }
  0x47   :  { %426 = vmatprep.subr.bf16.mxu0 %v564_v0 }
  0x49   :  { %409 = vmatpush3.bf16.msra.mxu1 %v453_v8 }
  0x4a   :  { %410 = vmatprep.subr.bf16.mxu1 %v564_v0  ;;  %427 = vmatpush3.bf16.msra.mxu0 %v460_v15 }
  0x4b   :  { %428 = vmatprep.subr.bf16.mxu0 %v564_v0 }
  0x4d   :  { %411 = vmatpush3.bf16.msra.mxu1 %v454_v9 }
  0x4e   :  { %412 = vmatprep.subr.bf16.mxu1 %v564_v0  ;;  %429 = vmatpush3.bf16.msra.mxu0 %v461_v16 }
  0x4f   :  { %430 = vmatprep.subr.bf16.mxu0 %v564_v0 }
  0x51   :  { %413 = vmatpush3.bf16.msra.mxu1 %v455_v10 }
  0x52   :  { %414 = vmatprep.subr.bf16.mxu1 %v564_v0  ;;  %431 = vmatpush3.bf16.msra.mxu0 %v462_v17 }
  0x53   :  { %432 = vmatprep.subr.bf16.mxu0 %v564_v0 }
  0x55   :  { %415 = vmatpush3.bf16.msra.mxu1 %v456_v11 }
  0x56   :  { %433 = vmatpush3.bf16.msra.mxu0 %v463_v27 }
  0x57   :  { %434 = vmatprep.subr.bf16.mxu0 %v564_v0 }
  0x5a   :  { %435 = vmatpush3.bf16.msra.mxu0 %v464_v28 }
 0x10f   :  { %v106_v19 = vpop.f32.mrb[0].mxu0 }
 0x110   :  { %v107_v20 = vadd.f32 %v353_v18, %v106_v19  ;;  %v398_v21 = vpop.f32.mrb[1].mxu0 }
 0x111   :  { %v109_v22 = vpop.f32.mrb[2].mxu0 }
 0x112   :  { %v112_v23 = vmul.f32 0.01, %v107_v20  ;;  %v399_v24 = vpop.f32.mrb[3].mxu0 }
 0x114   :  { %v113_v25 = vmax.f32 %v107_v20, %v112_v23 }
 0x116   :  { %v130_v26 = vpack.c.bf16 %v113_v25, %v113_v25 }
 0x118   :  { %417 = vmatmul.mubr.bf16.vlgmr.msra.gmra.mrb[0].mxu1 %v130_v26 }
 0x1eb   :  { %v218_v30 = vpop.f32.mrb[0].mxu1 }
 0x1ec   :  { %v219_v31 = vadd.f32 %v356_v29, %v218_v30  ;;  %v418_v32 = vpop.f32.mrb[1].mxu1 }
 0x1ed   :  { %v221_v33 = vpop.f32.mrb[2].mxu1 }
 0x1ee   :  { %v224_v34 = vmul.f32 0.01, %v219_v31  ;;  %v419_v35 = vpop.f32.mrb[3].mxu1 }
 0x1f0   :  { %v225_v36 = vmax.f32 %v219_v31, %v224_v34 }
 0x1f2   :  { %v242_v37 = vpack.c.bf16 %v225_v36, %v225_v36 }
 0x1f4   :  { %437 = vmatmul.mubr.bf16.vlgmr.msra.gmra.mrb[4].mxu0 %v242_v37 }
 0x2c7   :  { %v330_v39 = vpop.f32.mrb[4].mxu0 }
 0x2c8   :  { %v331_v40 = vadd.f32 %v365_v38, %v330_v39  ;;  %v438_v41 = vpop.f32.mrb[5].mxu0 }
 0x2c9   :  { %v333_v42 = vpop.f32.mrb[6].mxu0 }
 0x2ca   :  { %336 = vst [vmem:[#allocation8] sm:$0xff] %v331_v40  ;;  %v439_v43 = vpop.f32.mrb[7].mxu0 }
 0x2cb   :  { %542 = shalt.err (!%p539_p0)
}
 0x2cc   :  { %s543_s25 = scalar_lea.hbm %s658_s3, 128 }
 0x2cd   :  { %p544_p1 = scmp.ne.s32.totalorder %s658_s3, %s543_s25  ;;  %p547_p2 = scmp.lt.u32.totalorder %s543_s25, %s658_s3 }
 0x2cf   :  { %p549_p3 = pnand %p547_p2, %p544_p1 }
 0x2d1   :  { %552 = shalt.err (!%p549_p3)
}
 0x2d2   :  { %346 = dma.vmem_to_hbm [thread:$0]  %s344_s21, 128, %s658_s3, [#allocation4]  }
 0x2d3   :  { %557 = dma.done.wait [#allocation4], 128  }
 0x2d4   :  { %558 = vsyncadd [#allocation4], 4294967168 }
 0x2d5   :  { %350 = vsyncpa [#allocation3], 1 }
 0x2d6   :  { %351 = vsyncpa [#allocation6], 1 }
 0x2d7   :  { %352 = vsyncpa [#allocation4], 1 }

</bundles_post_ra>
